<compile_context>
chip_gen: v5e
topology: v5e:2x2
jax: 0.10.0
libtpu: 0.0.40
codegen_flags: <defaults>
</compile_context>

<pallas_src>
import functools

import jax
import jax.numpy as jnp
from jax.experimental import pallas as pl
from jax.experimental.pallas import tpu as pltpu


def _dfl_kernel(pred_ref, tw_ref, out_ref, *, loss_weight):
    # pred_ref: (C, TN)  classes on sublanes, rows on lanes.
    # tw_ref:   (2, TN)  row 0 = target, row 1 = per-row weight.
    # out_ref:  (1, TN)  lane-dense loss slab.
    pred = pred_ref[...].astype(jnp.float32)            # keep math in f32 (v5e)
    t = tw_ref[0:1, :].astype(jnp.float32)              # (1, TN)
    w = tw_ref[1:2, :].astype(jnp.float32)              # (1, TN)

    dis_left = t.astype(jnp.int32)                      # == target.long() for t >= 0
    dl_f = dis_left.astype(jnp.float32)
    w_left = (dl_f + 1.0) - t                           # dis_right - target
    w_right = t - dl_f                                  # target - dis_left

    # Numerically stable log-sum-exp over the class (sublane) axis.
    m = jnp.max(pred, axis=0, keepdims=True)            # (1, TN)
    lse = m + jnp.log(jnp.sum(jnp.exp(pred - m), axis=0, keepdims=True))

    # Single one-hot mask gathers both logits: roll classes up by one so row c
    # of `pred_up` holds class c+1, blend with the interpolation weights, then
    # one cross-sublane reduction.  (The roll rides the XLU slot.)
    C = pred.shape[0]
    cls_ids = jax.lax.broadcasted_iota(jnp.int32, pred.shape, 0)   # (C, TN)
    mask = cls_ids == dis_left                                     # (C, TN)
    pred_up = pltpu.roll(pred, shift=C - 1, axis=0)                # row c <- pred[c+1]
    blended = w_left * pred + w_right * pred_up                    # (C, TN)
    gathered = jnp.sum(jnp.where(mask, blended, 0.0), axis=0, keepdims=True)

    # CE(pred,dl)*w_l + CE(pred,dr)*w_r == lse - (w_l*logit_l + w_r*logit_r)
    # NOTE: if dis_left == C-1 (out of the valid-target contract, where
    # F.cross_entropy would raise) the rolled gather wraps to class 0 instead
    # of erroring — same "garbage in, garbage out" caveat as before.
    loss = (lse - gathered) * (jnp.float32(loss_weight) * w)
    out_ref[...] = loss.astype(out_ref.dtype)


def distribution_focal_loss_pallas(pred, target, weight=None, *,
                                   loss_weight=1.0, tn=1024):
    """pred: (N, C) float, target: (N,) float, weight: optional (N,) float.
    Returns loss of shape (N,) float32."""
    N, C = pred.shape
    if weight is None:
        weight = jnp.ones((N,), dtype=jnp.float32)

    # Row tile rides the lane axis: multiple of 128, no larger than padded N.
    tn = max(128, ((int(tn) + 127) // 128) * 128)
    tn = min(tn, ((N + 127) // 128) * 128)
    n_blocks = pl.cdiv(N, tn)
    N_pad = n_blocks * tn

    # Layout plumbing in the wrapper: classes -> sublanes, rows -> lanes.
    pred_t = jnp.transpose(pred)                                   # (C, N)
    tgt = target.astype(jnp.float32)
    w = weight.astype(jnp.float32)
    if N_pad != N:
        pad = N_pad - N
        pred_t = jnp.pad(pred_t, ((0, 0), (0, pad)))
        tgt = jnp.pad(tgt, (0, pad))
        w = jnp.pad(w, (0, pad))
    tw = jnp.stack([tgt, w], axis=0)                               # (2, N_pad)

    kernel = functools.partial(_dfl_kernel, loss_weight=float(loss_weight))

    out = pl.pallas_call(
        kernel,
        out_shape=jax.ShapeDtypeStruct((1, N_pad), jnp.float32),
        grid_spec=pltpu.PrefetchScalarGridSpec(
            num_scalar_prefetch=0,
            grid=(n_blocks,),
            in_specs=[
                pl.BlockSpec((C, tn), lambda i: (0, i)),   # pred, lane-dense
                pl.BlockSpec((2, tn), lambda i: (0, i)),   # packed target+weight
            ],
            out_specs=pl.BlockSpec((1, tn), lambda i: (0, i)),
        ),
        compiler_params=pltpu.CompilerParams(
            dimension_semantics=("parallel",)),
    )(pred_t, tw)
    return out.reshape(N_pad)[:N]


def _reference(pred, target, weight, loss_weight):
    # pure-JAX reference for sanity checking
    dis_left = target.astype(jnp.int32)
    dis_right = dis_left + 1
    wl = dis_right.astype(jnp.float32) - target
    wr = target - dis_left.astype(jnp.float32)
    logp = jax.nn.log_softmax(pred.astype(jnp.float32), axis=-1)
    ce_l = -jnp.take_along_axis(logp, dis_left[:, None], axis=-1)[:, 0]
    ce_r = -jnp.take_along_axis(logp, dis_right[:, None], axis=-1)[:, 0]
    loss = ce_l * wl + ce_r * wr
    loss = loss_weight * loss
    if weight is not None:
        loss = loss * weight
    return loss


if __name__ == "__main__":
    key = jax.random.PRNGKey(0)
    k1, k2, k3 = jax.random.split(key, 3)

    N, C = 200, 8           # C = n+1 with n = 7; N not a multiple of 128
    loss_weight = 0.25

    pred = jax.random.normal(k1, (N, C), dtype=jnp.float32)
    # target in [0, C-1) so dis_right = floor(target)+1 stays in range,
    # matching the valid-input contract of F.cross_entropy.
    target = jax.random.uniform(k2, (N,), dtype=jnp.float32,
                                minval=0.0, maxval=float(C - 1) - 1e-3)
    weight = jax.random.uniform(k3, (N,), dtype=jnp.float32,
                                minval=0.5, maxval=1.5)

    # With per-prediction weight.
    loss = distribution_focal_loss_pallas(pred, target, weight,
                                          loss_weight=loss_weight)
    loss = jax.block_until_ready(loss)
    ref = _reference(pred, target, weight, loss_weight)
    assert loss.shape == (N,)
    assert jnp.allclose(loss, ref, atol=1e-5, rtol=1e-5)

    # weight=None path (module forward without weight).
    loss_nw = distribution_focal_loss_pallas(pred, target,
                                             loss_weight=loss_weight)
    loss_nw = jax.block_until_ready(loss_nw)
    ref_nw = _reference(pred, target, None, loss_weight)
    assert jnp.allclose(loss_nw, ref_nw, atol=1e-5, rtol=1e-5)

    print("KERNEL_OK")
</pallas_src>

<mosaic_0001>
module attributes {stable_mosaic.version = 11 : i64} {
  func.func @_dfl_kernel(%arg0: i32, %arg1: memref<8x256xf32, #tpu.memory_space<vmem>>, %arg2: memref<2x256xf32, #tpu.memory_space<vmem>>, %arg3: memref<1x256xf32, #tpu.memory_space<vmem>>) attributes {dimension_semantics = [#tpu.dimension_semantics<parallel>], iteration_bounds = array<i64: 1>, scalar_prefetch = 0 : i64, scratch_operands = 0 : i64, tpu.core_type = #tpu.core_type<tc>, window_params = [{transform_indices = @transform_0, window_bounds = array<i64: 8, 256>}, {transform_indices = @transform_1, window_bounds = array<i64: 2, 256>}, {transform_indices = @transform_2, window_bounds = array<i64: 1, 256>}]} {
    %c0 = arith.constant 0 : index
    %c0_0 = arith.constant 0 : index
    %0 = vector.load %arg1[%c0, %c0_0] : memref<8x256xf32, #tpu.memory_space<vmem>>, vector<8x256xf32>
    %c0_1 = arith.constant 0 : index
    %c0_2 = arith.constant 0 : index
    %1 = vector.load %arg2[%c0_1, %c0_2] : memref<2x256xf32, #tpu.memory_space<vmem>>, vector<1x256xf32>
    %c1 = arith.constant 1 : index
    %c0_3 = arith.constant 0 : index
    %2 = vector.load %arg2[%c1, %c0_3] : memref<2x256xf32, #tpu.memory_space<vmem>>, vector<1x256xf32>
    %3 = arith.fptosi %1 : vector<1x256xf32> to vector<1x256xi32>
    %4 = arith.sitofp %3 : vector<1x256xi32> to vector<1x256xf32>
    %cst = arith.constant 1.000000e+00 : f32
    %5 = vector.broadcast %cst : f32 to vector<1x256xf32>
    %6 = arith.addf %4, %5 : vector<1x256xf32>
    %7 = arith.subf %6, %1 : vector<1x256xf32>
    %8 = arith.subf %1, %4 : vector<1x256xf32>
    %cst_4 = arith.constant dense<0xFF800000> : vector<256xf32>
    %9 = vector.multi_reduction <maximumf>, %0, %cst_4 [0] : vector<8x256xf32> to vector<256xf32>
    %10 = vector.shape_cast %9 : vector<256xf32> to vector<1x256xf32>
    %11 = vector.broadcast %10 : vector<1x256xf32> to vector<8x256xf32>
    %12 = arith.subf %0, %11 : vector<8x256xf32>
    %13 = math.exp %12 : vector<8x256xf32>
    %cst_5 = arith.constant dense<0.000000e+00> : vector<256xf32>
    %14 = vector.multi_reduction <add>, %13, %cst_5 [0] : vector<8x256xf32> to vector<256xf32>
    %15 = vector.shape_cast %14 : vector<256xf32> to vector<1x256xf32>
    %16 = math.log %15 : vector<1x256xf32>
    %17 = arith.addf %10, %16 : vector<1x256xf32>
    %18 = tpu.iota {dimensions = array<i32: 0>} : vector<8x256xi32>
    %19 = vector.broadcast %3 : vector<1x256xi32> to vector<8x256xi32>
    %20 = arith.cmpi eq, %18, %19 : vector<8x256xi32>
    %c7_i32 = arith.constant 7 : i32
    %21 = tpu.dynamic_rotate %0 by %c7_i32 dim 0 : vector<8x256xf32>, i32 -> vector<8x256xf32>
    %22 = vector.broadcast %7 : vector<1x256xf32> to vector<8x256xf32>
    %23 = arith.mulf %22, %0 : vector<8x256xf32>
    %24 = vector.broadcast %8 : vector<1x256xf32> to vector<8x256xf32>
    %25 = arith.mulf %24, %21 : vector<8x256xf32>
    %26 = arith.addf %23, %25 : vector<8x256xf32>
    %cst_6 = arith.constant 0.000000e+00 : f32
    %27 = vector.broadcast %cst_6 : f32 to vector<8x256xf32>
    %28 = arith.select %20, %26, %27 : vector<8x256xi1>, vector<8x256xf32>
    %cst_7 = arith.constant dense<0.000000e+00> : vector<256xf32>
    %29 = vector.multi_reduction <add>, %28, %cst_7 [0] : vector<8x256xf32> to vector<256xf32>
    %30 = vector.shape_cast %29 : vector<256xf32> to vector<1x256xf32>
    %31 = arith.subf %17, %30 : vector<1x256xf32>
    %cst_8 = arith.constant 2.500000e-01 : f32
    %32 = vector.broadcast %cst_8 : f32 to vector<1x256xf32>
    %33 = arith.mulf %32, %2 : vector<1x256xf32>
    %34 = arith.mulf %31, %33 : vector<1x256xf32>
    %c0_9 = arith.constant 0 : index
    %c0_10 = arith.constant 0 : index
    %35 = vector.load %arg3[%c0_9, %c0_10] : memref<1x256xf32, #tpu.memory_space<vmem>>, vector<1x256xf32>
    tpu.vector_store %arg3[%c0_9, %c0_10], %34 {strides = array<i32>} : memref<1x256xf32, #tpu.memory_space<vmem>>, vector<1x256xf32>,
    return
  }
  func.func @transform_0(%arg0: i32) -> (i32, i32) {
    %c0_i32 = arith.constant 0 : i32
    %c0_i32_0 = arith.constant 0 : i32
    return %c0_i32, %arg0 : i32, i32
  }
  func.func @transform_1(%arg0: i32) -> (i32, i32) {
    %c0_i32 = arith.constant 0 : i32
    %c0_i32_0 = arith.constant 0 : i32
    return %c0_i32, %arg0 : i32, i32
  }
  func.func @transform_2(%arg0: i32) -> (i32, i32) {
    %c0_i32 = arith.constant 0 : i32
    %c0_i32_0 = arith.constant 0 : i32
    return %c0_i32, %arg0 : i32, i32
  }
}

</mosaic_0001>

<bundles_post_ra>
// kernel: tpu_custom_call.1
= control target key start
LH: loop header
LB: loop body
LE: loop exit
PB: predicated region body
PF: predicated region fallthrough
CT: control target
= control target key end

     0   :  { %7 = vsyncpa [#allocation3], 0  ;;  %s286_s0 = inlined_call_operand.hbm [shape: f32[8,256], index: 0, kind: input, shape index: {}]   ;;  %s287_s1 = inlined_call_operand.hbm [shape: f32[2,256], index: 1, kind: input, shape index: {}]   ;;  %s288_s2 = inlined_call_operand.hbm [shape: f32[1,256], index: 2, kind: output, shape index: {}]  }
   0x1   :  { %8 = vsyncpa [#allocation6], 0 }
   0x2   :  { %9 = vsyncpa [#allocation4], 0  ;;  %s15_s11 = sshll.u32 %s286_s0, 4  ;;  %s257_s12 = smov [#allocation2]   ;;  %s16_s11 = int_to_ptr.hbm [resolvable:$true] %s15_s11 }
   0x3   :  { %s17_s13 = sshll.u32 %s257_s12, 4  ;;  %s26_s16 = sshll.u32 %s287_s1, 4  ;;  %s18_s13 = int_to_ptr.vmem [resolvable:$true] %s17_s13  ;;  %s27_s16 = int_to_ptr.hbm [resolvable:$true] %s26_s16 }
   0x4   :  { %20 = dma.hbm_to_vmem [thread:$0]  %s16_s11, 256, %s18_s13, [#allocation3]  }
   0x5   :  { %s258_s17 = smov [#allocation5]  }
   0x6   :  { %s28_s18 = sshll.u32 %s258_s17, 4  ;;  %s29_s18 = int_to_ptr.vmem [resolvable:$true] %s28_s18 }
   0x7   :  { %31 = dma.hbm_to_vmem [thread:$0]  %s27_s16, 64, %s29_s18, [#allocation6]  }
   0x8   :  { %251 = dma.done.wait [#allocation3], 256  }
   0x9   :  { %252 = vsyncadd [#allocation3], 4294967040 }
   0xa   :  { %253 = dma.done.wait [#allocation6], 64  }
   0xb   :  { %254 = vsyncadd [#allocation6], 4294967232  ;;  %v40_v0 = vld [vmem:[#allocation2] sm:$0xff]  ;;  %v41_v1 = vld [vmem:[#allocation2 + $0x8] sm:$0xff]  ;;  %v86_v20 = vlaneseq  ;;  %s259_s0 = smov [#allocation7]   ;;  %s152_s21 = sshll.u32 %s288_s2, 4  ;;  %s153_s21 = int_to_ptr.hbm [resolvable:$true] %s152_s21 }
   0xc   :  { %v42_v2 = vld [vmem:[#allocation5] ss:$2 sm:$0x3]  ;;  %v50_v5 = vrot.slane %v40_v0, 4  ;;  %v56_v6 = vrot.slane %v41_v1, 4  ;;  %v92_v18 = vrot.slane %v40_v0, 1 }
   0xd   :  { %vm163_vm0 = vcmp.lt.s32.totalorder %v42_v2, 0  ;;  %v164_v3 = vceil.f32 %v42_v2  ;;  %v165_v4 = vfloor.f32 %v42_v2  ;;  %v93_v21 = vrot.slane %v41_v1, 1  ;;  %s150_s1 = sshll.u32 %s259_s0, 4  ;;  %s151_s1 = int_to_ptr.vmem [resolvable:$true] %s150_s1 }
   0xe   :  { %v51_v8 = vmax.f32 %v40_v0, %v50_v5  ;;  %v57_v10 = vmax.f32 %v41_v1, %v56_v6  ;;  %v87_v32 = vshrl.u32 %v86_v20, 7  ;;  %vm137_vm3 = vcmask 1040384  }
   0xf   :  { %v166_v7 = vsel %vm163_vm0, %v164_v3, %v165_v4  ;;  %v44_v3 = vld [vmem:[#allocation5 + $0x1] ss:$2 sm:$0x3]  ;;  %vm142_vm4 = vcmp.lt.s32.totalorder %v86_v20, 256 }
  0x10   :  { %v167_v9 = vcvt.f32.s32 %v166_v7  ;;  %v52_v11 = vrot.slane %v51_v8, 2  ;;  %v58_v13 = vrot.slane %v57_v10, 2  ;;  %v126_v7 = vmul.f32 0.25, %v44_v3 }
  0x12   :  { %v46_v12 = vcvt.s32.f32 %v167_v9  ;;  %v53_v14 = vmax.f32 %v51_v8, %v52_v11  ;;  %v59_v17 = vmax.f32 %v57_v10, %v58_v13  ;;  %v88_v33 = vperm.slane %v167_v9, 0 }
  0x13   :  { %v89_v36 = vperm.slane %v167_v9, 1 }
  0x14   :  { %v47_v15 = vadd.f32 1.0, %v46_v12  ;;  %v49_v16 = vsub.f32 %v42_v2, %v46_v12  ;;  %v54_v19 = vrot.slane %v53_v14, 1  ;;  %v60_v23 = vrot.slane %v59_v17, 1 }
  0x15   :  { %vm90_vm1 = vcmp.eq.s32.totalorder %v87_v32, %v88_v33  ;;  %vm91_vm2 = vcmp.eq.s32.totalorder %v87_v32, %v89_v36 }
  0x16   :  { %v48_v22 = vsub.f32 %v47_v15, %v42_v2  ;;  %v102_v24 = vperm.slane %v49_v16, 0  ;;  %v103_v25 = vperm.slane %v49_v16, 1  ;;  %v55_v26 = vmax.f32 %v53_v14, %v54_v19 }
  0x17   :  { %v61_v27 = vmax.f32 %v59_v17, %v60_v23  ;;  %v128_v15 = vperm.slane %v126_v7, 0  ;;  %v129_v16 = vperm.slane %v126_v7, 1 }
  0x18   :  { %v95_v28 = vperm.slane %v48_v22, 0  ;;  %v96_v29 = vperm.slane %v48_v22, 1  ;;  %v106_v30 = vmul.f32 %v102_v24, %v92_v18  ;;  %v62_v31 = vsub.f32 %v40_v0, %v55_v26 }
  0x19   :  { %v107_v34 = vmul.f32 %v103_v25, %v93_v21  ;;  %v63_v35 = vsub.f32 %v41_v1, %v61_v27 }
  0x1a   :  { %v99_v37 = vmul.f32 %v95_v28, %v40_v0  ;;  %v100_v38 = vmul.f32 %v96_v29, %v41_v1  ;;  %v64_v39 = vmul.f32 1.442695, %v62_v31 }
  0x1b   :  { %v66_v40 = vmul.f32 1.442695, %v63_v35 }
  0x1c   :  { %v108_v41 = vadd.f32 %v106_v30, %v99_v37  ;;  %171 = vpow2.f32 %v64_v39  ;;  %v109_v42 = vadd.f32 %v107_v34, %v100_v38 }
  0x1d   :  { %173 = vpow2.f32 %v66_v40 }
  0x1e   :  { %v110_v43 = vsel %vm90_vm1, %v108_v41, 0.0  ;;  %v111_v44 = vsel %vm91_vm2, %v109_v42, 0.0 }
  0x1f   :  { %v112_v46 = vrot.slane %v110_v43, 4  ;;  %v118_v49 = vrot.slane %v111_v44, 4 }
  0x21   :  { %v113_v53 = vadd.f32 %v112_v46, %v110_v43  ;;  %v119_v55 = vadd.f32 %v118_v49, %v111_v44 }
  0x22   :  { %v172_v45 = vpop.eup %171 }
  0x23   :  { %v174_v47 = vpop.eup %173  ;;  %v68_v48 = vrot.slane %v172_v45, 4  ;;  %v114_v59 = vrot.slane %v113_v53, 2  ;;  %v120_v61 = vrot.slane %v119_v55, 2 }
  0x24   :  { %v74_v50 = vrot.slane %v174_v47, 4 }
  0x25   :  { %v69_v51 = vadd.f32 %v172_v45, %v68_v48  ;;  %v115_v1 = vadd.f32 %v114_v59, %v113_v53  ;;  %v121_v2 = vadd.f32 %v120_v61, %v119_v55 }
  0x26   :  { %v75_v52 = vadd.f32 %v174_v47, %v74_v50 }
  0x27   :  { %v70_v54 = vrot.slane %v69_v51, 2  ;;  %v116_v4 = vrot.slane %v115_v1, 1  ;;  %v122_v5 = vrot.slane %v121_v2, 1 }
  0x28   :  { %v76_v56 = vrot.slane %v75_v52, 2 }
  0x29   :  { %v71_v57 = vadd.f32 %v70_v54, %v69_v51  ;;  %v117_v10 = vadd.f32 %v116_v4, %v115_v1  ;;  %v123_v12 = vadd.f32 %v122_v5, %v121_v2 }
  0x2a   :  { %v77_v58 = vadd.f32 %v76_v56, %v75_v52 }
  0x2b   :  { %v72_v60 = vrot.slane %v71_v57, 1 }
  0x2c   :  { %v78_v62 = vrot.slane %v77_v58, 1 }
  0x2d   :  { %v73_v63 = vadd.f32 %v72_v60, %v71_v57 }
  0x2e   :  { %v79_v0 = vadd.f32 %v78_v62, %v77_v58 }
  0x2f   :  { %175 = vlog2.f32 %v73_v63 }
  0x30   :  { %177 = vlog2.f32 %v79_v0 }
  0x35   :  { %v176_v6 = vpop.eup %175 }
  0x36   :  { %v178_v8 = vpop.eup %177  ;;  %v81_v9 = vmul.f32 0.6931472, %v176_v6 }
  0x37   :  { %v83_v11 = vmul.f32 0.6931472, %v178_v8 }
  0x38   :  { %v84_v13 = vadd.f32 %v81_v9, %v55_v26 }
  0x39   :  { %v85_v14 = vadd.f32 %v83_v11, %v61_v27 }
  0x3a   :  { %v124_v17 = vsub.f32 %v84_v13, %v117_v10 }
  0x3b   :  { %v125_v18 = vsub.f32 %v85_v14, %v123_v12 }
  0x3c   :  { %v132_v19 = vmul.f32 %v128_v15, %v124_v17 }
  0x3d   :  { %v133_v21 = vmul.f32 %v129_v16, %v125_v18 }
  0x3f   :  { %v136_v22 = vrot.slane %v133_v21, 7 }
  0x41   :  { %v138_v23 = vsel %vm137_vm3, %v132_v19, %v136_v22 }
  0x42   :  { %144 = vst.msk [vmem:[#allocation7] sm:$0x3] %vm142_vm4, %v138_v23 }
  0x43   :  { %155 = dma.vmem_to_hbm [thread:$0]  %s151_s1, 32, %s153_s21, [#allocation4]  }
  0x44   :  { %255 = dma.done.wait [#allocation4], 32  }
  0x45   :  { %256 = vsyncadd [#allocation4], 4294967264 }
  0x46   :  { %160 = vsyncpa [#allocation3], 1 }
  0x47   :  { %161 = vsyncpa [#allocation6], 1 }
  0x48   :  { %162 = vsyncpa [#allocation4], 1 }

</bundles_post_ra>
